<compile_context>
chip_gen: v7x
topology: tpu7x:2x2x1
jax: 0.10.0
libtpu: 0.0.40
codegen_flags: <defaults>
</compile_context>

<pallas_src>
import functools

import jax
import jax.numpy as jnp
from jax.experimental import pallas as pl
from jax.experimental.pallas import tpu as pltpu

PAD_IX, BOS_IX, EOS_IX = 0, 1, 2

LAMBDA_AUTO = 1.0
LAMBDA_ADV = 1.0    # kept for parity with the module; unused by ARModel.forward
LAMBDA_CROSS = 1.0  # kept for parity with the module; unused by ARModel.forward

NEG_INF = -1e30
VMEM_BUDGET = 28 * 1024 * 1024   # tile-selection budget (safe under v7x 64 MiB)
VMEM_LIMIT = 48 * 1024 * 1024    # explicit scoped-VMEM limit (< v7x physical)


def _round_up(n, m):
    return ((n + m - 1) // m) * m


# --------------------------------------------------------------------------
# Tile selection (VMEM-budgeted; big vocab tiles, >=2 batch blocks for v7x)
# --------------------------------------------------------------------------
def _pick_dec_tiles(b_min, t_pad, hidden, vocab, budget=VMEM_BUDGET):
    """Pick (batch_tile, vocab_tile) for the fused decoder/CE kernel."""
    vocab128 = _round_up(vocab, 128)

    def usage(bt, vt):
        rows = bt * t_pad
        per_in = (rows * hidden * 2          # emb bf16
                  + bt * hidden * 4          # z f32
                  + hidden * hidden * 2      # W_dec bf16
                  + hidden * 4               # b_dec f32
                  + hidden * vt * 2          # W_out tile bf16
                  + vt * 4                   # b_out tile f32
                  + rows * 4)                # targets i32
        per_out = 2 * rows * 4               # loss + valid f32
        scratch = rows * hidden * 2 + 3 * rows * 4
        temps = 2 * rows * vt * 4            # logits + exp/where temporaries
        return 2 * (per_in + per_out) + scratch + temps  # inputs/outputs dbl-buffered

    # batch tile: multiple of 8; target <= ~512 rows/block and >=2 blocks so the
    # 'parallel' batch axis actually shards across both v7x TensorCores.
    bt_cap = max(8, (max(8, 512 // t_pad) // 8) * 8)
    if b_min >= 16:
        bt_cap = min(bt_cap, _round_up((b_min + 1) // 2, 8))
    bt_cap = max(8, bt_cap)

    # vocab tile: prefer the biggest slab (MXU/DMA granularity, fewer grid steps)
    v_cands = sorted({128, 256, 512, 1024, 2048, min(vocab128, 2048)}, reverse=True)
    for vt in v_cands:
        if vt > max(vocab128, 128):
            continue
        bt = bt_cap
        while bt > 8 and usage(bt, vt) > budget:
            bt -= 8
        if usage(bt, vt) <= budget:
            return bt, vt
    # TODO(synk): for very large H (>=2048) or very long T, additionally tile
    # W_dec / the T axis; the fallback below may exceed VMEM at extreme shapes.
    return 8, 128


# --------------------------------------------------------------------------
# Kernel 1: encoder  z = mean_T( tanh(emb @ W_enc + b_enc) )
# --------------------------------------------------------------------------
def _enc_mean_kernel(emb_ref, w_ref, b_ref, z_ref, *, t_total):
    bt, tp, h = emb_ref.shape
    x = emb_ref[...].reshape(bt * tp, h)                         # bf16
    hid = jnp.tanh(jnp.dot(x, w_ref[...], preferred_element_type=jnp.float32)
                   + b_ref[...])                                 # f32 epilogue
    hid = hid.reshape(bt, tp, h)
    if tp > t_total:
        # padded time steps hold zero embeddings -> tanh(b) != 0, mask them out
        tmask = jax.lax.broadcasted_iota(jnp.int32, (1, tp, 1), 1) < t_total
        hid = jnp.where(tmask, hid, 0.0)
    z_ref[...] = jnp.sum(hid, axis=1) * (1.0 / float(t_total))


# --------------------------------------------------------------------------
# Kernel 2: fused (emb+z) + decoder hidden + vocab-tiled projection + masked CE
# --------------------------------------------------------------------------
def _dec_ce_kernel(emb_ref, z_ref, wd_ref, bd_ref, wo_ref, bo_ref, t_ref,
                   loss_ref, valid_ref, dh_sc, m_sc, l_sc, tl_sc,
                   *, pad_ix, v_tile, vocab):
    v = pl.program_id(1)
    bt, tp, h = emb_ref.shape
    rows = bt * tp

    @pl.when(v == 0)
    def _():
        # Fused (emb + z) add and decoder hidden: computed once per batch block,
        # kept bf16 VMEM-resident across all vocab tiles (no HBM round-trip).
        x = emb_ref[...].astype(jnp.float32) + z_ref[...][:, None, :]
        x = x.reshape(rows, h).astype(jnp.bfloat16)
        hid = jnp.dot(x, wd_ref[...], preferred_element_type=jnp.float32)
        dh_sc[...] = jnp.tanh(hid + bd_ref[...]).astype(jnp.bfloat16)
        m_sc[...] = jnp.full_like(m_sc, NEG_INF)
        l_sc[...] = jnp.zeros_like(l_sc)
        tl_sc[...] = jnp.zeros_like(tl_sc)

    # Vocab-tile projection on the MXU (bf16 in, f32 accumulate).
    logits = (jnp.dot(dh_sc[...], wo_ref[...], preferred_element_type=jnp.float32)
              + bo_ref[...])                                     # [rows, v_tile]

    local = jax.lax.broadcasted_iota(jnp.int32, (1, v_tile), 1)  # tile-local cols
    tgt = t_ref[...].reshape(rows, 1)

    if vocab % v_tile != 0:
        # Padded vocab columns (last tile only) must not affect max / sum-exp.
        logits = jnp.where(local + v * v_tile < vocab, logits, NEG_INF)

    # Online logsumexp across vocab tiles.
    m_prev = m_sc[...]
    m_new = jnp.maximum(m_prev, jnp.max(logits, axis=-1, keepdims=True))
    alpha = jnp.exp(m_prev - m_new)
    l_sc[...] = alpha * l_sc[...] + jnp.sum(jnp.exp(logits - m_new),
                                            axis=-1, keepdims=True)
    m_sc[...] = m_new
    # The target logit lives in exactly one vocab tile.
    tl_sc[...] += jnp.sum(jnp.where(local == tgt - v * v_tile, logits, 0.0),
                          axis=-1, keepdims=True)

    @pl.when(v == pl.num_programs(1) - 1)
    def _():
        valid = (tgt != pad_ix).astype(jnp.float32)              # [rows, 1]
        per_row = m_sc[...] + jnp.log(l_sc[...]) - tl_sc[...]
        loss_ref[...] = (per_row * valid).reshape(bt, tp, 1)     # PAD rows -> 0
        valid_ref[...] = valid.reshape(bt, tp, 1)


# --------------------------------------------------------------------------
# Wrapper: one encoder call + one fused decoder/CE call over concatenated rows
# --------------------------------------------------------------------------
def _encode_decode_losses(params, x, y):
    """x, y: [B_total, T] int32.  Returns per-row (loss, valid) of shape [B_total, T]."""
    b_total, t = x.shape
    hidden = params["w_enc"].shape[0]
    vocab = params["w_out"].shape[1]

    t_pad = _round_up(t, 16)                        # bf16 sublane multiple
    bt, vt = _pick_dec_tiles(_round_up(b_total, 8), t_pad, hidden, vocab)
    b_pad = _round_up(b_total, bt)
    vocab_p = _round_up(vocab, vt)

    # bf16 embedding gather; pad B / T (padded positions get PAD targets).
    emb = jnp.take(params["emb"], x.astype(jnp.int32), axis=0)          # bf16
    emb_p = jnp.pad(emb, ((0, b_pad - b_total), (0, t_pad - t), (0, 0)))
    tgt_p = jnp.pad(y.astype(jnp.int32), ((0, b_pad - b_total), (0, t_pad - t)),
                    constant_values=PAD_IX).reshape(b_pad, t_pad, 1)

    # ---- encoder: z = mean_T tanh(emb @ W_enc + b_enc) ----
    z = pl.pallas_call(
        functools.partial(_enc_mean_kernel, t_total=t),
        out_shape=jax.ShapeDtypeStruct((b_pad, hidden), jnp.float32),
        grid=(b_pad // bt,),
        in_specs=[
            pl.BlockSpec((bt, t_pad, hidden), lambda i: (i, 0, 0)),
            pl.BlockSpec((hidden, hidden), lambda i: (0, 0)),
            pl.BlockSpec((1, hidden), lambda i: (0, 0)),
        ],
        out_specs=pl.BlockSpec((bt, hidden), lambda i: (i, 0)),
        compiler_params=pltpu.CompilerParams(
            dimension_semantics=("parallel",), vmem_limit_bytes=VMEM_LIMIT),
    )(emb_p, params["w_enc"].astype(jnp.bfloat16),
      params["b_enc"].reshape(1, -1).astype(jnp.float32))

    # ---- fused decoder hidden + vocab-tiled projection + masked CE ----
    w_out_p = jnp.pad(params["w_out"].astype(jnp.bfloat16),
                      ((0, 0), (0, vocab_p - vocab)))
    b_out_p = jnp.pad(params["b_out"].astype(jnp.float32),
                      ((0, vocab_p - vocab),)).reshape(1, -1)

    loss_rows, valid_rows = pl.pallas_call(
        functools.partial(_dec_ce_kernel, pad_ix=PAD_IX, v_tile=vt, vocab=vocab),
        out_shape=(jax.ShapeDtypeStruct((b_pad, t_pad, 1), jnp.float32),
                   jax.ShapeDtypeStruct((b_pad, t_pad, 1), jnp.float32)),
        grid=(b_pad // bt, vocab_p // vt),
        in_specs=[
            pl.BlockSpec((bt, t_pad, hidden), lambda i, v: (i, 0, 0)),  # emb
            pl.BlockSpec((bt, hidden), lambda i, v: (i, 0)),            # z
            pl.BlockSpec((hidden, hidden), lambda i, v: (0, 0)),        # W_dec
            pl.BlockSpec((1, hidden), lambda i, v: (0, 0)),             # b_dec
            pl.BlockSpec((hidden, vt), lambda i, v: (0, v)),            # W_out tile
            pl.BlockSpec((1, vt), lambda i, v: (0, v)),                 # b_out tile
            pl.BlockSpec((bt, t_pad, 1), lambda i, v: (i, 0, 0)),       # targets
        ],
        out_specs=(pl.BlockSpec((bt, t_pad, 1), lambda i, v: (i, 0, 0)),
                   pl.BlockSpec((bt, t_pad, 1), lambda i, v: (i, 0, 0))),
        scratch_shapes=[
            pltpu.VMEM((bt * t_pad, hidden), jnp.bfloat16),   # decoder hidden
            pltpu.VMEM((bt * t_pad, 1), jnp.float32),         # running max
            pltpu.VMEM((bt * t_pad, 1), jnp.float32),         # running sum-exp
            pltpu.VMEM((bt * t_pad, 1), jnp.float32),         # target logit
        ],
        compiler_params=pltpu.CompilerParams(
            dimension_semantics=("parallel", "arbitrary"),
            vmem_limit_bytes=VMEM_LIMIT),
    )(emb_p, z, params["w_dec"].astype(jnp.bfloat16),
      params["b_dec"].reshape(1, -1).astype(jnp.float32),
      w_out_p, b_out_p, tgt_p)

    loss_rows = loss_rows.reshape(b_pad, t_pad)[:b_total, :t]
    valid_rows = valid_rows.reshape(b_pad, t_pad)[:b_total, :t]
    return loss_rows, valid_rows


# --------------------------------------------------------------------------
# Synthetic encoder / decoder parameters (deterministic)
# --------------------------------------------------------------------------
def init_params(key, vocab, hidden):
    ks = jax.random.split(key, 7)
    s = 0.1
    return {
        "emb":   (jax.random.normal(ks[0], (vocab, hidden), jnp.float32) * s
                  ).astype(jnp.bfloat16),       # bf16 table halves the gather stream
        "w_enc": jax.random.normal(ks[1], (hidden, hidden), jnp.float32) * s,
        "b_enc": jax.random.normal(ks[2], (hidden,), jnp.float32) * s,
        "w_dec": jax.random.normal(ks[3], (hidden, hidden), jnp.float32) * s,
        "b_dec": jax.random.normal(ks[4], (hidden,), jnp.float32) * s,
        "w_out": jax.random.normal(ks[5], (hidden, vocab), jnp.float32) * s,
        "b_out": jax.random.normal(ks[6], (vocab,), jnp.float32) * s,
    }


# --------------------------------------------------------------------------
# ARModel.forward
# --------------------------------------------------------------------------
def ar_forward(params, src_sentences, tgt_sentences, noise=False, wrap_scalars=False):
    # TODO(synk): noise=True input augmentation and teacher_forcing_ratio=0.5 are
    # stochastic training behaviors; deterministic (fully teacher-forced) path used.
    zero = jnp.zeros((), jnp.float32)
    auto_loss, adv_loss, cross_loss, num_toks = zero, zero, zero, zero

    pairs = []
    if src_sentences is not None:
        pairs.append((src_sentences[:, :-1], src_sentences[:, 1:]))
        num_toks = num_toks + jnp.sum(src_sentences != PAD_IX).astype(jnp.float32)
    if tgt_sentences is not None:
        pairs.append((tgt_sentences[:, :-1], tgt_sentences[:, 1:]))
        num_toks = num_toks + jnp.sum(tgt_sentences != PAD_IX).astype(jnp.float32)

    # Note: if a segment contains only PAD targets its mean is NaN, matching
    # torch.nn.CrossEntropyLoss(ignore_index=PAD, reduction='mean') semantics.
    if len(pairs) == 2 and pairs[0][0].shape[1] == pairs[1][0].shape[1]:
        # One encoder + one decoder/CE launch over src||tgt; per-domain means
        # recovered from per-row losses, so semantics match two separate calls.
        x_all = jnp.concatenate([p[0] for p in pairs], axis=0)
        y_all = jnp.concatenate([p[1] for p in pairs], axis=0)
        loss_rows, valid_rows = _encode_decode_losses(params, x_all, y_all)
        b0 = pairs[0][0].shape[0]
        for sl in (slice(0, b0), slice(b0, None)):
            seg = jnp.sum(loss_rows[sl]) / jnp.sum(valid_rows[sl])
            auto_loss = auto_loss + LAMBDA_AUTO * seg
    else:
        for x, y in pairs:
            loss_rows, valid_rows = _encode_decode_losses(params, x, y)
            seg = jnp.sum(loss_rows) / jnp.sum(valid_rows)
            auto_loss = auto_loss + LAMBDA_AUTO * seg

    # ARModel.forward never invokes the discriminator / cross-reconstruction.
    if wrap_scalars:
        auto_loss, adv_loss = auto_loss[None], adv_loss[None]
        cross_loss, num_toks = cross_loss[None], num_toks[None]

    return {
        "loss": auto_loss + adv_loss + cross_loss,
        "auto_loss": auto_loss,
        "adv_loss": adv_loss,
        "cross_loss": cross_loss,
        "num_toks": num_toks,
    }


# --------------------------------------------------------------------------
# Pure-JAX reference (same bf16 matmul casts) for correctness checking.
# --------------------------------------------------------------------------
def _reference_auto_loss(params, x, y):
    emb = jnp.take(params["emb"], x, axis=0).astype(jnp.float32)
    B, T, H = emb.shape
    h = jnp.tanh(jnp.dot(emb.reshape(B * T, H).astype(jnp.bfloat16),
                         params["w_enc"].astype(jnp.bfloat16),
                         preferred_element_type=jnp.float32) + params["b_enc"])
    z = jnp.mean(h.reshape(B, T, H), axis=1)
    dec_in = (emb + z[:, None, :]).reshape(B * T, H).astype(jnp.bfloat16)
    dh = jnp.tanh(jnp.dot(dec_in, params["w_dec"].astype(jnp.bfloat16),
                          preferred_element_type=jnp.float32) + params["b_dec"])
    logits = jnp.dot(dh.astype(jnp.bfloat16), params["w_out"].astype(jnp.bfloat16),
                     preferred_element_type=jnp.float32) + params["b_out"]
    t = y.reshape(-1)
    lse = jax.scipy.special.logsumexp(logits, axis=-1)
    tl = jnp.take_along_axis(logits, t[:, None], axis=-1)[:, 0]
    valid = (t != PAD_IX).astype(jnp.float32)
    return jnp.sum((lse - tl) * valid) / jnp.sum(valid)


# --------------------------------------------------------------------------
if __name__ == "__main__":
    # Small but structurally interesting shapes:
    #   VOCAB=4000 with vt=2048 -> 2 vocab tiles (online LSE) + padded-column mask
    #   T=29 -> Tp=32 exercises the time-padding mask and PAD-target masking
    #   B_total=16, bt=8 -> 2 batch blocks (v7x megacore path)
    VOCAB, HIDDEN = 4000, 128
    B, S = 8, 30

    key = jax.random.PRNGKey(0)
    k_params, k_src, k_tgt = jax.random.split(key, 3)
    params = init_params(k_params, VOCAB, HIDDEN)

    # Deterministic token sequences: BOS ... EOS PAD, content tokens in [3, VOCAB).
    src = jax.random.randint(k_src, (B, S), 3, VOCAB, dtype=jnp.int32)
    tgt = jax.random.randint(k_tgt, (B, S), 3, VOCAB, dtype=jnp.int32)
    src = src.at[:, 0].set(BOS_IX).at[:, -2].set(EOS_IX).at[:, -1].set(PAD_IX)
    tgt = tgt.at[:, 0].set(BOS_IX).at[:, -2].set(EOS_IX).at[:, -1].set(PAD_IX)

    result = ar_forward(params, src, tgt, noise=False, wrap_scalars=False)
    jax.block_until_ready(result)

    ref_loss = (_reference_auto_loss(params, src[:, :-1], src[:, 1:])
                + _reference_auto_loss(params, tgt[:, :-1], tgt[:, 1:]))

    assert result["loss"].shape == ()
    assert bool(jnp.isfinite(result["loss"]))
    assert float(result["num_toks"]) == float(jnp.sum(src != PAD_IX) + jnp.sum(tgt != PAD_IX))
    assert float(result["adv_loss"]) == 0.0 and float(result["cross_loss"]) == 0.0
    assert bool(jnp.allclose(result["loss"], ref_loss, rtol=2e-2, atol=2e-3)), \
        (float(result["loss"]), float(ref_loss))

    print("KERNEL_OK")
</pallas_src>

<mosaic_0001>
module attributes {stable_mosaic.version = 11 : i64} {
  func.func @_enc_mean_kernel(%arg0: i32, %arg1: memref<8x32x128xbf16, #tpu.memory_space<vmem>>, %arg2: memref<128x128xbf16, #tpu.memory_space<vmem>>, %arg3: memref<1x128xf32, #tpu.memory_space<vmem>>, %arg4: memref<8x128xf32, #tpu.memory_space<vmem>>) attributes {dimension_semantics = [#tpu.dimension_semantics<parallel>], iteration_bounds = array<i64: 2>, scalar_prefetch = 0 : i64, scratch_operands = 0 : i64, tpu.core_type = #tpu.core_type<tc>, window_params = [{transform_indices = @transform_0, window_bounds = array<i64: 8, 32, 128>}, {pipeline_mode = #tpu.pipeline_mode<synchronous>, transform_indices = @transform_1, window_bounds = array<i64: 128, 128>}, {pipeline_mode = #tpu.pipeline_mode<synchronous>, transform_indices = @transform_2, window_bounds = array<i64: 1, 128>}, {transform_indices = @transform_3, window_bounds = array<i64: 8, 128>}]} {
    %c0 = arith.constant 0 : index
    %c0_0 = arith.constant 0 : index
    %c0_1 = arith.constant 0 : index
    %0 = vector.load %arg1[%c0, %c0_0, %c0_1] : memref<8x32x128xbf16, #tpu.memory_space<vmem>>, vector<8x32x128xbf16>
    %1 = vector.shape_cast %0 : vector<8x32x128xbf16> to vector<256x128xbf16>
    %c0_2 = arith.constant 0 : index
    %c0_3 = arith.constant 0 : index
    %2 = vector.load %arg2[%c0_2, %c0_3] : memref<128x128xbf16, #tpu.memory_space<vmem>>, vector<128x128xbf16>
    %cst = arith.constant dense<0.000000e+00> : vector<256x128xf32>
    %3 = tpu.matmul %1, %2, %cst {dimension_numbers = #tpu.dot_dimension_numbers<[1], [0], [0], [1], [0, 0, 1, 1], [], []>} : vector<256x128xbf16>, vector<128x128xbf16>, vector<256x128xf32> -> vector<256x128xf32>
    %c0_4 = arith.constant 0 : index
    %c0_5 = arith.constant 0 : index
    %4 = vector.load %arg3[%c0_4, %c0_5] : memref<1x128xf32, #tpu.memory_space<vmem>>, vector<1x128xf32>
    %5 = vector.broadcast %4 : vector<1x128xf32> to vector<256x128xf32>
    %6 = arith.addf %3, %5 : vector<256x128xf32>
    %7 = math.tanh %6 : vector<256x128xf32>
    %8 = vector.shape_cast %7 : vector<256x128xf32> to vector<8x32x128xf32>
    %9 = tpu.iota {dimensions = array<i32: 1>} : vector<1x32x1xi32>
    %c29_i32 = arith.constant 29 : i32
    %10 = vector.broadcast %c29_i32 : i32 to vector<1x32x1xi32>
    %11 = arith.cmpi slt, %9, %10 : vector<1x32x1xi32>
    %cst_6 = arith.constant 0.000000e+00 : f32
    %12 = vector.shape_cast %11 : vector<1x32x1xi1> to vector<1x32x1xi1>
    %13 = vector.broadcast %12 : vector<1x32x1xi1> to vector<8x32x128xi1>
    %14 = vector.broadcast %cst_6 : f32 to vector<8x32x128xf32>
    %15 = arith.select %13, %8, %14 : vector<8x32x128xi1>, vector<8x32x128xf32>
    %cst_7 = arith.constant dense<0.000000e+00> : vector<8x128xf32>
    %16 = vector.multi_reduction <add>, %15, %cst_7 [1] : vector<8x32x128xf32> to vector<8x128xf32>
    %cst_8 = arith.constant 0.0344827585 : f32
    %17 = vector.broadcast %cst_8 : f32 to vector<8x128xf32>
    %18 = arith.mulf %16, %17 : vector<8x128xf32>
    %c0_9 = arith.constant 0 : index
    %c0_10 = arith.constant 0 : index
    %19 = vector.load %arg4[%c0_9, %c0_10] : memref<8x128xf32, #tpu.memory_space<vmem>>, vector<8x128xf32>
    tpu.vector_store %arg4[%c0_9, %c0_10], %18 {strides = array<i32>} : memref<8x128xf32, #tpu.memory_space<vmem>>, vector<8x128xf32>,
    return
  }
  func.func @transform_0(%arg0: i32) -> (i32, i32, i32) {
    %c0_i32 = arith.constant 0 : i32
    %c0_i32_0 = arith.constant 0 : i32
    %c0_i32_1 = arith.constant 0 : i32
    return %arg0, %c0_i32, %c0_i32_0 : i32, i32, i32
  }
  func.func @transform_1(%arg0: i32) -> (i32, i32) {
    %c0_i32 = arith.constant 0 : i32
    %c0_i32_0 = arith.constant 0 : i32
    %c0_i32_1 = arith.constant 0 : i32
    return %c0_i32, %c0_i32_0 : i32, i32
  }
  func.func @transform_2(%arg0: i32) -> (i32, i32) {
    %c0_i32 = arith.constant 0 : i32
    %c0_i32_0 = arith.constant 0 : i32
    %c0_i32_1 = arith.constant 0 : i32
    return %c0_i32, %c0_i32_0 : i32, i32
  }
  func.func @transform_3(%arg0: i32) -> (i32, i32) {
    %c0_i32 = arith.constant 0 : i32
    %c0_i32_0 = arith.constant 0 : i32
    return %arg0, %c0_i32 : i32, i32
  }
}

</mosaic_0001>

<bundles_post_ra>
// kernel: tpu_custom_call.1
= control target key start
LH: loop header
LB: loop body
LE: loop exit
PB: predicated region body
PF: predicated region fallthrough
CT: control target
= control target key end

     0   :  { %8 = vsyncpa [#allocation3], 0  ;;  %s1563_s0 = inlined_call_operand.hbm [shape: bf16[16,32,128], index: 0, kind: input, shape index: {}]   ;;  %s1564_s1 = inlined_call_operand.hbm [shape: bf16[128,128], index: 1, kind: input, shape index: {}]   ;;  %s1565_s2 = inlined_call_operand.vmem [shape: f32[1,128], index: 2, kind: input, shape index: {}]   ;;  %s1566_s3 = inlined_call_operand.hbm [shape: f32[16,128], index: 3, kind: output, shape index: {}]  }
   0x1   :  { %10 = vsyncpa [#allocation3 + $0x1], 0 }
   0x2   :  { %11 = vsyncpa [#allocation6], 0 }
   0x3   :  { %12 = vsyncpa [#allocation4], 0 }
   0x4   :  { %14 = vsyncpa [#allocation4 + $0x1], 0  ;;  %s1279_s12 = smov 0   ;;  %s1281_s13 = smov 0  }
   0x5   :  { %s1283_s14 = smov 0   ;;  %s1285_s15 = smov 0  }
   0x6 LB: > { %s1300_s16 = sadd.s32 4294967295, %s1252_s15   ;;  %s846_s17 = sadd.s32 4294967294, %s1252_s15   ;;  %s1252_s15 = sphi %s1285_s15, %s1586_s15   ;;  %s1248_s14 = sphi %s1283_s14, %s1585_s14   ;;  %s1244_s13 = sphi %s1281_s13, %s1584_s13   ;;  %s1240_s12 = sphi %s1279_s12, %s1583_s12  }
   0x7   : > { %p40_p0 = scmp.ne.s32.totalorder %s1244_s13, %s1240_s12  ;;  %p1567_p1 = scmp.eq.s32.totalorder %s1300_s16, 0 }
   0x8   : > { %p112_p3 = scmp.eq.s32.totalorder %s846_s17, 1  ;;  %p847_p5 = scmp.ge.s32.totalorder %s1252_s15, 1 }
   0x9   : > { %p1309_p4 = por %p1567_p1, %p40_p0  ;;  %p119_p7 = scmp.lt.s32.totalorder %s1252_s15, 3 }
   0xa   : > { %p1314_p6 = por %p112_p3, %p40_p0  ;;  %s1254_s21 = smov [#allocation5]  }
   0xb   : > { %s1570_s18 = scalar_select %p1309_p4, 1, 0 }
   0xc   : > { %s1571_s19 = scalar_select %p1314_p6, 1, 0 }
   0xd   : > { %p1319_p8 = pnand %p847_p5, %p119_p7  ;;  %s131_s22 = sshll.u32 %s1254_s21, 4  ;;  %s1323_s22 = int_to_ptr.vmem [resolvable:$true] %s131_s22 }
   0xe   : > { %s1335_s24 = sadd.s32 1, %s1252_s15   ;;  %s27_s25 = sadd.s32 1, %s1248_s14 }
   0xf   : > { %s1572_s20 = scalar_select %p1319_p8, 1, 0 }
  0x10   : > { %p985_p9 = pneg %p1319_p8  ;;  %s24_s26 = ssub.s32 %s1252_s15, %s1335_s24 }
  0x11   : > { %s1124_s29 = scalar_lea.hbm %s1564_s1, 1024 }
  0x12   : > { %p1330_p11 = pnand %p985_p9, %p1567_p1  ;;  %p1125_p12 = scmp.ne.s32.totalorder %s1564_s1, %s1124_s29 }
  0x13   : > { %p1131_p5 = scmp.lt.u32.totalorder %s1124_s29, %s1564_s1 }
  0x14   : > { %p1126_p13 = pneg %p1330_p11 }
  0x16   : > { %p1127_p0 = pnand %p1126_p13, %p1125_p12 }
  0x18   : > { %p1128_p3 = pneg %p1127_p0 }
  0x1a   : > { %p1133_p7 = pnand %p1131_p5, %p1128_p3 }
  0x1c   : > { %1136 = shalt.err (!%p1133_p7)
}
  0x1d   : > { %s1137_s7 = scalar_lea.vmem %s1323_s22, 1024  ;;  %p1145_p2 = scmp.lt.s32.totalorder %s1323_s22, %s1323_s22 }
  0x1e   : > { %p1138_p9 = scmp.ne.s32.totalorder %s1323_s22, %s1137_s7  ;;  %p1146_p6 = scmp.lt.s32.totalorder %s1137_s7, %s1137_s7 }
  0x20   : > { %p1140_p10 = pnand %p1138_p9, %p1126_p13  ;;  %p1147_p4 = por %p1146_p6, %p1145_p2 }
  0x22   : > { %p1141_p1 = pneg %p1140_p10 }
  0x24   : > { %p1148_p8 = pnand %p1147_p4, %p1141_p1 }
  0x26   : > { %1151 = shalt.err (!%p1148_p8)
}
  0x27   : > { %s1255_s8 = smov 64   ;;  %s1256_s9 = smov 4  }
  0x28   : > { %988 = dma.hbm_to_vmem [thread:$0]  (!%p1330_p11), %s1564_s1, 1024, %s1323_s22, [#allocation6], %s1255_s8, %s1255_s8, %s1256_s9  }
  0x29   : > { %p25_p1 = scmp.eq.s32.totalorder %s24_s26, 0  ;;  %p34_p2 = scmp.ne.s32.totalorder %s1248_s14, %s1244_s13 }
  0x2a   : > { %p35_p4 = scmp.eq.s32.totalorder %s1252_s15, 0  ;;  %p998_p6 = scmp.lt.s32.totalorder %s1252_s15, 2 }
  0x2b   : > { %s1369_s17 = scalar_select %p25_p1, %s1248_s14, %s27_s25  }
  0x2c   : > { %p36_p8 = por %p35_p4, %p34_p2  ;;  %p1574_p10 = scmp.eq.s32.totalorder %s1300_s16, 1 }
  0x2d   : > { %s148_s23 = sand.u32 1, %s1248_s14   ;;  %s888_s27 = sshll.u32 %s1252_s15, 11 }
  0x2e   : > { %p1373_p12 = por %p1574_p10, %p34_p2  ;;  %s850_s28 = sshll.u32 %s148_s23, 7 }
  0x2f   : > { %s1382_s4 = scalar_lea.hbm %s1563_s0, %s888_s27  ;;  %s152_s22 = scalar_lea.vmem [#allocation2], %s850_s28 }
  0x30   : > { %s160_s25 = sshll.u32 %s152_s22, 4  ;;  %p1384_p11 = pnand %p998_p6, %p36_p8  ;;  %s1388_s25 = int_to_ptr.vmem [resolvable:$true] %s160_s25 }
  0x31   : > { %s1390_s5 = scalar_lea.sflag [#allocation3], %s148_s23  ;;  %s1152_s6 = scalar_lea.hbm %s1382_s4, 2048 }
  0x32   : > { %p1153_p13 = scmp.ne.s32.totalorder %s1382_s4, %s1152_s6  ;;  %p1154_p0 = pneg %p1384_p11 }
  0x33   : > { %s1157_s11 = scalar_lea.hbm %s1563_s0, 4096  ;;  %p1158_p7 = scmp.lt.u32.totalorder %s1382_s4, %s1563_s0 }
  0x34   : > { %p1155_p3 = pnand %p1154_p0, %p1153_p13  ;;  %p1159_p9 = scmp.lt.u32.totalorder %s1157_s11, %s1152_s6 }
  0x35   : > { %p1161_p2 = scmp.lt.u32.totalorder %s1152_s6, %s1382_s4 }
  0x36   : > { %p1156_p5 = pneg %p1155_p3  ;;  %p1160_p1 = por %p1159_p9, %p1158_p7 }
  0x38   : > { %p1162_p4 = por %p1161_p2, %p1160_p1 }
  0x3a   : > { %p1163_p6 = pnand %p1162_p4, %p1156_p5 }
  0x3c   : > { %1166 = shalt.err (!%p1163_p6)
}
  0x3d   : > { %s1167_s23 = scalar_lea.vmem %s1388_s25, 2048  ;;  %s1257_s29 = smov [#allocation2]  }
  0x3e   : > { %p1168_p8 = scmp.ne.s32.totalorder %s1388_s25, %s1167_s23  ;;  %s1172_s30 = sshll.u32 %s1257_s29, 4  ;;  %s1173_s30 = int_to_ptr.vmem [resolvable:$false] %s1172_s30 }
  0x3f   : > { %s1174_s22 = scalar_lea.vmem %s1173_s30, 4096  ;;  %p1175_p3 = scmp.lt.s32.totalorder %s1388_s25, %s1173_s30 }
  0x40   : > { %p1170_p10 = pnand %p1168_p8, %p1154_p0  ;;  %p1176_p7 = scmp.lt.s32.totalorder %s1174_s22, %s1167_s23 }
  0x42   : > { %p1171_p13 = pneg %p1170_p10  ;;  %p1177_p9 = por %p1176_p7, %p1175_p3 }
  0x44   : > { %p1178_p1 = pnand %p1177_p9, %p1171_p13 }
  0x46   : > { %1181 = shalt.err (!%p1178_p1)
}
  0x47   : > { %992 = dma.hbm_to_vmem [thread:$0]  (!%p1384_p11), %s1382_s4, 2048, %s1388_s25, %s1390_s5, %s1255_s8, %s1255_s8, %s1256_s9  }
  0x48   : > { %p1577_p0 = scmp.ne.s32.totalorder %s1572_s20, 0 }
  0x49   : > { %s1424_s6 = sand.u32 (!%p1577_p0), 1, %s1244_s13   ;;  %p1578_p5 = scmp.ne.s32.totalorder (!%p1577_p0), %s1570_s18, 0 }
  0x4a   : > { %172 = sbr.rel (%p1577_p0) target bundleno = 414 (0x19e), region = 32  ;;  %s855_s7 = sshll.u32 (!%p1577_p0), %s1424_s6, 7 }
  0x4b   : > { %s175_s10 = scalar_lea.sflag (!%p1577_p0), [#allocation3], %s1424_s6  ;;  %s1428_s11 = scalar_lea.vmem (!%p1577_p0), [#allocation2], %s855_s7 }
  0x51   : > { %1227 = dma.done.wait (%p1578_p5), %s175_s10, 2048  }
  0x52   : > { %1229 = vsyncadd (%p1578_p5), %s175_s10, 4294965248  ;;  %p1579_p11 = scmp.eq.s32.totalorder %s1300_s16, 0 }
  0x54   : > { %1231 = dma.done.wait (%p1579_p11), [#allocation6], 1024   ;;  %p1580_p2 = pmov %p1579_p11 }
  0x55   : > { %v1036_v0 = vld [vmem:[#allocation5] sm:$0xff]   ;;  %v1037_v1 = vld [vmem:[#allocation5 + $0x8] sm:$0xff]   ;;  %v1038_v2 = vld [vmem:[#allocation5 + $0x10] sm:$0xff]   ;;  %v599_v41 = vlaneseq  ;;  %vm736_vm1 = vcmask 1041409   ;;  %vm738_vm2 = vcmask 1042434   ;;  %s857_s8 = sshll.u32 %s1424_s6, 3 }
  0x56   : > { %1233 = vsyncadd (%p1580_p2), [#allocation6], 4294966272  ;;  %913 = vmatprep.subr.bf16.mxu0 %v1036_v0  ;;  %961 = vmatprep.subr.bf16.mxu1 %v1036_v0  ;;  %v1039_v3 = vld [vmem:[#allocation5 + $0x18] sm:$0xff]   ;;  %v1044_v4 = vld [vmem:[%s1428_s11] sm:$0xff]   ;;  %vm740_vm3 = vcmask 1043459   ;;  %vm742_vm4 = vcmask 1044484  }
  0x57   : > { %914 = vmatpush3.bf16.msra.mxu0 %v1036_v0  ;;  %969 = vmatpush3.bf16.msra.mxu1 %v1036_v0  ;;  %v1045_v5 = vld [vmem:[%s1428_s11 + $0x40] sm:$0xff]   ;;  %v1041_v7 = vld [vmem:[#allocation5 + $0x28] sm:$0xff]   ;;  %v1042_v8 = vld [vmem:[#allocation5 + $0x30] sm:$0xff]   ;;  %v600_v54 = vshrl.u32 %v599_v41, 7  ;;  %vm744_vm5 = vcmask 1045509   ;;  %vm746_vm6 = vcmask 1046534  }
  0x58   : > { %915 = vmatprep.subr.bf16.mxu0 %v1037_v1  ;;  %962 = vmatprep.subr.bf16.mxu1 %v1037_v1  ;;  %v1040_v6 = vld [vmem:[#allocation5 + $0x20] sm:$0xff]   ;;  %v1043_v9 = vld [vmem:[#allocation5 + $0x38] sm:$0xff]   ;;  %v1046_v10 = vld [vmem:[%s1428_s11 + $0x8] sm:$0xff]   ;;  %s884_s9 = sshll.u32 %s1300_s16, 7  ;;  %s204_s4 = scalar_lea.vmem [#allocation7], %s857_s8  ;;  %vm748_vm7 = vcmask 1047559  }
  0x59   : > { %929 = vmatprep.mubr.bf16.mxu0 %v1044_v4  ;;  %945 = vmatprep.mubr.bf16.mxu1 %v1045_v5  ;;  %v1047_v11 = vld [vmem:[%s1428_s11 + $0x48] sm:$0xff]   ;;  %v1048_v12 = vld [vmem:[%s1428_s11 + $0x10] sm:$0xff]   ;;  %v1050_v14 = vld [vmem:[%s1428_s11 + $0x18] sm:$0xff]   ;;  %v1475_v62 = vadd.s32 24, %v600_v54  ;;  %s766_s25 = sshll.u32 %s204_s4, 4  ;;  %s1519_s27 = scalar_lea.hbm %s1566_s3, %s884_s9  ;;  %s1521_s25 = int_to_ptr.vmem [resolvable:$true] %s766_s25 }
  0x5a   : > { %v1049_v13 = vld [vmem:[%s1428_s11 + $0x50] sm:$0xff]   ;;  %v1051_v15 = vld [vmem:[%s1428_s11 + $0x58] sm:$0xff]   ;;  %v1052_v16 = vld [vmem:[%s1428_s11 + $0x20] sm:$0xff]   ;;  %s753_s16 = scalar_lea.sflag [#allocation4], %s1424_s6  ;;  %s1182_s28 = scalar_lea.vmem %s1521_s25, 128 }
  0x5b   : > { %916 = vmatpush3.bf16.msra.mxu0 %v1037_v1  ;;  %970 = vmatpush3.bf16.msra.mxu1 %v1037_v1  ;;  %v1053_v17 = vld [vmem:[%s1428_s11 + $0x60] sm:$0xff]   ;;  %v1054_v18 = vld [vmem:[%s1428_s11 + $0x28] sm:$0xff]   ;;  %v1056_v20 = vld [vmem:[%s1428_s11 + $0x30] sm:$0xff]   ;;  %vm607_vm0 = vcmp.lt.s32.totalorder %v1475_v62, 29  ;;  %p1183_p4 = scmp.ne.s32.totalorder %s1521_s25, %s1182_s28  ;;  %s1258_s23 = smov [#allocation7]  }
  0x5c   : > { %917 = vmatprep.subr.bf16.mxu0 %v1038_v2  ;;  %963 = vmatprep.subr.bf16.mxu1 %v1038_v2  ;;  %v1055_v19 = vld [vmem:[%s1428_s11 + $0x68] sm:$0xff]   ;;  %v1057_v21 = vld [vmem:[%s1428_s11 + $0x70] sm:$0xff]   ;;  %v1058_v22 = vld [vmem:[%s1428_s11 + $0x38] sm:$0xff]   ;;  %s1186_s29 = sshll.u32 %s1258_s23, 4  ;;  %s1187_s29 = int_to_ptr.vmem [resolvable:$false] %s1186_s29 }
  0x5d   : > { %v1059_v23 = vld [vmem:[%s1428_s11 + $0x78] sm:$0xff]   ;;  %v1457_v24 = vld [vmem:[%s1565_s2] ss:$0 sm:$0xff]  ;;  %p1184_p6 = pnand %p1183_p4, %p1373_p12  ;;  %s1188_s30 = scalar_lea.vmem %s1187_s29, 256 }
  0x5e   : > { %p1189_p10 = scmp.lt.s32.totalorder %s1521_s25, %s1187_s29  ;;  %p1190_p13 = scmp.lt.s32.totalorder %s1188_s30, %s1182_s28 }
  0x5f   : > { %918 = vmatpush3.bf16.msra.mxu0 %v1038_v2  ;;  %971 = vmatpush3.bf16.msra.mxu1 %v1038_v2  ;;  %p1185_p8 = pneg %p1184_p6 }
  0x60   : > { %919 = vmatprep.subr.bf16.mxu0 %v1039_v3  ;;  %964 = vmatprep.subr.bf16.mxu1 %v1039_v3  ;;  %p1191_p3 = por %p1190_p13, %p1189_p10 }
  0x62   : > { %p1192_p7 = pnand %p1191_p3, %p1185_p8 }
  0x63   : > { %920 = vmatpush3.bf16.msra.mxu0 %v1039_v3  ;;  %972 = vmatpush3.bf16.msra.mxu1 %v1039_v3 }
  0x64   : > { %921 = vmatprep.subr.bf16.mxu0 %v1040_v6  ;;  %965 = vmatprep.subr.bf16.mxu1 %v1040_v6 }
  0x67   : > { %922 = vmatpush3.bf16.msra.mxu0 %v1040_v6  ;;  %973 = vmatpush3.bf16.msra.mxu1 %v1040_v6 }
  0x68   : > { %923 = vmatprep.subr.bf16.mxu0 %v1041_v7  ;;  %966 = vmatprep.subr.bf16.mxu1 %v1041_v7 }
  0x6b   : > { %924 = vmatpush3.bf16.msra.mxu0 %v1041_v7  ;;  %974 = vmatpush3.bf16.msra.mxu1 %v1041_v7 }
  0x6c   : > { %925 = vmatprep.subr.bf16.mxu0 %v1042_v8  ;;  %967 = vmatprep.subr.bf16.mxu1 %v1042_v8 }
  0x6f   : > { %926 = vmatpush3.bf16.msra.mxu0 %v1042_v8  ;;  %975 = vmatpush3.bf16.msra.mxu1 %v1042_v8 }
  0x70   : > { %927 = vmatprep.subr.bf16.mxu0 %v1043_v9  ;;  %968 = vmatprep.subr.bf16.mxu1 %v1043_v9 }
  0x73   : > { %928 = vmatpush3.bf16.msra.mxu0 %v1043_v9  ;;  %976 = vmatpush3.bf16.msra.mxu1 %v1043_v9 }
  0x76   : > { %930 = vmatmul.mubr.bf16.vlgmr.msra.gmra.mrb[0].mxu0 %v1046_v10  ;;  %946 = vmatmul.mubr.bf16.vlgmr.msra.gmra.mrb[0].mxu1 %v1047_v11 }
  0x77   : > { %933 = vmatprep.mubr.bf16.mxu0 %v1048_v12  ;;  %949 = vmatprep.mubr.bf16.mxu1 %v1049_v13 }
  0x7e   : > { %934 = vmatmul.mubr.bf16.gmra.mrb[4].mxu0 %v1050_v14  ;;  %950 = vmatmul.mubr.bf16.gmra.mrb[4].mxu1 %v1051_v15 }
  0x7f   : > { %937 = vmatprep.mubr.bf16.mxu0 %v1052_v16  ;;  %953 = vmatprep.mubr.bf16.mxu1 %v1053_v17 }
  0x86   : > { %938 = vmatmul.mubr.bf16.gmra.mrb[8].mxu0 %v1054_v18  ;;  %954 = vmatmul.mubr.bf16.gmra.mrb[8].mxu1 %v1055_v19 }
  0x87   : > { %941 = vmatprep.mubr.bf16.mxu0 %v1056_v20  ;;  %957 = vmatprep.mubr.bf16.mxu1 %v1057_v21 }
  0x8e   : > { %942 = vmatmul.mubr.bf16.gmra.mrb[12].mxu0 %v1058_v22  ;;  %958 = vmatmul.mubr.bf16.gmra.mrb[12].mxu1 %v1059_v23 }
 0x149   : > { %v931_v25 = vpop.f32.mrb[0].mxu0  ;;  %v947_v26 = vpop.f32.mrb[0].mxu1 }
 0x14a   : > { %v449_v27 = vadd.f32 %v931_v25, %v1457_v24  ;;  %v513_v28 = vadd.f32 %v947_v26, %v1457_v24  ;;  %v440_v29 = vpop.f32.mrb[1].mxu0  ;;  %v504_v30 = vpop.f32.mrb[1].mxu1 }
 0x14b   : > { %v441_v31 = vadd.f32 %v1457_v24, %v440_v29  ;;  %v932_v32 = vpop.f32.mrb[2].mxu0  ;;  %v948_v33 = vpop.f32.mrb[2].mxu1  ;;  %v505_v34 = vadd.f32 %v1457_v24, %v504_v30 }
 0x14c   : > { %v443_v35 = vpop.f32.mrb[3].mxu0  ;;  %v507_v36 = vpop.f32.mrb[3].mxu1  ;;  %1060 = vtanh.f32 %v449_v27  ;;  %v452_v37 = vadd.f32 %v932_v32, %v1457_v24  ;;  %v516_v40 = vadd.f32 %v948_v33, %v1457_v24 }
 0x14d   : > { %1062 = vtanh.f32 %v513_v28  ;;  %v444_v38 = vadd.f32 %v1457_v24, %v443_v35  ;;  %v508_v39 = vadd.f32 %v1457_v24, %v507_v36 }
 0x14e   : > { %1064 = vtanh.f32 %v441_v31 }
 0x14f   : > { %1066 = vtanh.f32 %v505_v34 }
 0x150   : > { %1068 = vtanh.f32 %v452_v37 }
 0x151   : > { %v935_v42 = vpop.f32.mrb[4].mxu0  ;;  %v951_v43 = vpop.f32.mrb[4].mxu1  ;;  %1070 = vtanh.f32 %v444_v38 }
 0x152   : > { %v465_v44 = vadd.f32 %v935_v42, %v1457_v24  ;;  %v529_v45 = vadd.f32 %v951_v43, %v1457_v24  ;;  %v456_v46 = vpop.f32.mrb[5].mxu0  ;;  %v520_v47 = vpop.f32.mrb[5].mxu1  ;;  %1072 = vtanh.f32 %v508_v39 }
 0x153   : > { %v457_v48 = vadd.f32 %v1457_v24, %v456_v46  ;;  %v936_v49 = vpop.f32.mrb[6].mxu0  ;;  %v952_v50 = vpop.f32.mrb[6].mxu1  ;;  %1074 = vtanh.f32 %v516_v40  ;;  %v521_v51 = vadd.f32 %v1457_v24, %v520_v47 }
 0x154   : > { %v459_v52 = vpop.f32.mrb[7].mxu0  ;;  %v523_v53 = vpop.f32.mrb[7].mxu1  ;;  %1076 = vtanh.f32 %v465_v44  ;;  %v468_v55 = vadd.f32 %v936_v49, %v1457_v24  ;;  %v532_v60 = vadd.f32 %v952_v50, %v1457_v24 }
 0x155   : > { %1078 = vtanh.f32 %v529_v45  ;;  %v460_v56 = vadd.f32 %v1457_v24, %v459_v52  ;;  %v524_v58 = vadd.f32 %v1457_v24, %v523_v53 }
 0x156   : > { %v1061_v57 = vpop.eup %1060  ;;  %1080 = vtanh.f32 %v457_v48 }
 0x157   : > { %v1063_v59 = vpop.eup %1062  ;;  %1082 = vtanh.f32 %v521_v51 }
 0x158   : > { %v1065_v61 = vpop.eup %1064  ;;  %1084 = vtanh.f32 %v468_v55 }
 0x159   : > { %v939_v63 = vpop.f32.mrb[8].mxu0  ;;  %v955_v0 = vpop.f32.mrb[8].mxu1  ;;  %1086 = vtanh.f32 %v460_v56 }
 0x15a   : > { %v1067_v1 = vpop.eup %1066  ;;  %v481_v2 = vadd.f32 %v939_v63, %v1457_v24  ;;  %v545_v3 = vadd.f32 %v955_v0, %v1457_v24  ;;  %v472_v4 = vpop.f32.mrb[9].mxu0  ;;  %1088 = vtanh.f32 %v524_v58 }
 0x15b   : > { %v536_v5 = vpop.f32.mrb[9].mxu1  ;;  %v1069_v6 = vpop.eup %1068  ;;  %v473_v7 = vadd.f32 %v1457_v24, %v472_v4  ;;  %1090 = vtanh.f32 %v532_v60 }
 0x15c   : > { %v940_v8 = vpop.f32.mrb[10].mxu0  ;;  %v956_v9 = vpop.f32.mrb[10].mxu1  ;;  %v537_v11 = vadd.f32 %v1457_v24, %v536_v5  ;;  %1092 = vtanh.f32 %v481_v2  ;;  %v619_v25 = vsel %vm607_vm0, %v1069_v6, 0.0 }
 0x15d   : > { %v1071_v10 = vpop.eup %1070  ;;  %v475_v12 = vpop.f32.mrb[11].mxu0  ;;  %v484_v16 = vadd.f32 %v940_v8, %v1457_v24  ;;  %1094 = vtanh.f32 %v545_v3  ;;  %v548_v27 = vadd.f32 %v956_v9, %v1457_v24 }
 0x15e   : > { %v539_v13 = vpop.f32.mrb[11].mxu1  ;;  %v1073_v14 = vpop.eup %1072  ;;  %v648_v15 = vadd.f32 %v1071_v10, %v1065_v61  ;;  %v476_v19 = vadd.f32 %v1457_v24, %v475_v12  ;;  %1096 = vtanh.f32 %v473_v7 }
 0x15f   : > { %v1075_v17 = vpop.eup %1074  ;;  %v684_v18 = vadd.f32 %v1073_v14, %v1067_v1  ;;  %v540_v22 = vadd.f32 %v1457_v24, %v539_v13  ;;  %1098 = vtanh.f32 %v537_v11 }
 0x160   : > { %v1077_v20 = vpop.eup %1076  ;;  %v649_v21 = vadd.f32 %v1061_v57, %v648_v15  ;;  %v635_v29 = vsel %vm607_vm0, %v1075_v17, 0.0  ;;  %1100 = vtanh.f32 %v484_v16 }
 0x161   : > { %v1079_v23 = vpop.eup %1078  ;;  %v685_v26 = vadd.f32 %v1063_v59, %v684_v18  ;;  %v943_v31 = vpop.f32.mrb[12].mxu0  ;;  %1102 = vtanh.f32 %v476_v19 }
 0x162   : > { %v1081_v28 = vpop.eup %1080  ;;  %v650_v30 = vadd.f32 %v649_v21, %v619_v25  ;;  %v959_v32 = vpop.f32.mrb[12].mxu1  ;;  %v497_v35 = vadd.f32 %v943_v31, %v1457_v24  ;;  %1104 = vtanh.f32 %v540_v22 }
 0x163   : > { %v1083_v33 = vpop.eup %1082  ;;  %v1490_v34 = vadd.f32 %v685_v26, %v635_v29  ;;  %v561_v36 = vadd.f32 %v959_v32, %v1457_v24  ;;  %v488_v37 = vpop.f32.mrb[13].mxu0  ;;  %1106 = vtanh.f32 %v548_v27 }
 0x164   : > { %v552_v38 = vpop.f32.mrb[13].mxu1  ;;  %v1085_v39 = vpop.eup %1084  ;;  %v651_v40 = vrot.slane %v650_v30, 4  ;;  %v489_v41 = vadd.f32 %v1457_v24, %v488_v37  ;;  %1108 = vtanh.f32 %v497_v35 }
 0x165   : > { %v944_v42 = vpop.f32.mrb[14].mxu0  ;;  %v960_v43 = vpop.f32.mrb[14].mxu1  ;;  %v553_v45 = vadd.f32 %v1457_v24, %v552_v38  ;;  %v623_v53 = vsel %vm607_vm0, %v1085_v39, 0.0  ;;  %1110 = vtanh.f32 %v561_v36  ;;  %v687_v18 = vrot.slane %v1490_v34, 4 }
 0x166   : > { %v1087_v44 = vpop.eup %1086  ;;  %v491_v46 = vpop.f32.mrb[15].mxu0  ;;  %v652_v49 = vadd.f32 %v651_v40, %v650_v30  ;;  %v500_v51 = vadd.f32 %v944_v42, %v1457_v24  ;;  %1112 = vtanh.f32 %v489_v41  ;;  %v564_v61 = vadd.f32 %v960_v43, %v1457_v24 }
 0x167   : > { %v555_v47 = vpop.f32.mrb[15].mxu1  ;;  %v1089_v48 = vpop.eup %1088  ;;  %v657_v50 = vadd.f32 %v1087_v44, %v1081_v28  ;;  %v492_v58 = vadd.f32 %v1457_v24, %v491_v46  ;;  %1114 = vtanh.f32 %v553_v45  ;;  %v688_v35 = vadd.f32 %v687_v18, %v1490_v34 }
 0x168   : > { %v1091_v52 = vpop.eup %1090  ;;  %v693_v54 = vadd.f32 %v1089_v48, %v1083_v33  ;;  %v653_v56 = vrot.slane %v652_v49, 2  ;;  %v556_v63 = vadd.f32 %v1457_v24, %v555_v47  ;;  %1116 = vtanh.f32 %v500_v51 }
 0x169   : > { %v1093_v55 = vpop.eup %1092  ;;  %v658_v57 = vadd.f32 %v1077_v20, %v657_v50  ;;  %v639_v1 = vsel %vm607_vm0, %v1091_v52, 0.0  ;;  %1118 = vtanh.f32 %v492_v58 }
 0x16a   : > { %v1095_v59 = vpop.eup %1094  ;;  %v694_v60 = vadd.f32 %v1079_v23, %v693_v54  ;;  %v654_v6 = vadd.f32 %v653_v56, %v652_v49  ;;  %1120 = vtanh.f32 %v556_v63  ;;  %v689_v49 = vrot.slane %v688_v35, 2 }
 0x16b   : > { %v1097_v0 = vpop.eup %1096  ;;  %v659_v2 = vadd.f32 %v658_v57, %v623_v53  ;;  %1122 = vtanh.f32 %v564_v61 }
 0x16c   : > { %v1099_v3 = vpop.eup %1098  ;;  %v695_v4 = vadd.f32 %v694_v60, %v639_v1  ;;  %v655_v14 = vrot.slane %v654_v6, 1  ;;  %v690_v60 = vadd.f32 %v689_v49, %v688_v35 }
 0x16d   : > { %v1101_v5 = vpop.eup %1100  ;;  %v660_v7 = vrot.slane %v659_v2, 4 }
 0x16e   : > { %v1103_v8 = vpop.eup %1102  ;;  %v696_v19 = vrot.slane %v695_v4, 4  ;;  %v627_v20 = vsel %vm607_vm0, %v1101_v5, 0.0  ;;  %v656_v30 = vadd.f32 %v655_v14, %v654_v6  ;;  %v691_v6 = vrot.slane %v690_v60, 1 }
 0x16f   : > { %v1105_v9 = vpop.eup %1104  ;;  %v661_v10 = vadd.f32 %v660_v7, %v659_v2  ;;  %v666_v11 = vadd.f32 %v1103_v8, %v1097_v0 }
 0x170   : > { %v1107_v12 = vpop.eup %1106  ;;  %v702_v24 = vadd.f32 %v1105_v9, %v1099_v3  ;;  %v697_v36 = vadd.f32 %v696_v19, %v695_v4  ;;  %v720_v45 = vmul.f32 0.03448276, %v656_v30 }
 0x171   : > { %v1109_v13 = vpop.eup %1108  ;;  %v662_v15 = vrot.slane %v661_v10, 2  ;;  %v667_v16 = vadd.f32 %v1093_v55, %v666_v11  ;;  %v643_v25 = vsel %vm607_vm0, %v1107_v12, 0.0 }
 0x172   : > { %v1111_v17 = vpop.eup %1110  ;;  %v703_v21 = vadd.f32 %v1095_v59, %v702_v24  ;;  %v698_v50 = vrot.slane %v697_v36, 2  ;;  %v692_v24 = vadd.f32 %v691_v6, %v690_v60 }
 0x173   : > { %v1113_v22 = vpop.eup %1112  ;;  %v663_v23 = vadd.f32 %v662_v15, %v661_v10  ;;  %v668_v26 = vadd.f32 %v667_v16, %v627_v20 }
 0x174   : > { %v1115_v27 = vpop.eup %1114  ;;  %v704_v28 = vadd.f32 %v703_v21, %v643_v25  ;;  %v699_v1 = vadd.f32 %v698_v50, %v697_v36  ;;  %v724_v19 = vmul.f32 0.03448276, %v692_v24 }
 0x175   : > { %v1117_v29 = vpop.eup %1116  ;;  %v664_v31 = vrot.slane %v663_v23, 1  ;;  %v669_v32 = vrot.slane %v668_v26, 4 }
 0x176   : > { %v1119_v33 = vpop.eup %1118  ;;  %v705_v37 = vrot.slane %v704_v28, 4  ;;  %v631_v51 = vsel %vm607_vm0, %v1117_v29, 0.0  ;;  %v700_v8 = vrot.slane %v699_v1, 1 }
 0x177   : > { %v1121_v38 = vpop.eup %1120  ;;  %v665_v39 = vadd.f32 %v664_v31, %v663_v23  ;;  %v670_v40 = vadd.f32 %v669_v32, %v668_v26  ;;  %v675_v41 = vadd.f32 %v1119_v33, %v1113_v22 }
 0x178   : > { %v1123_v42 = vpop.eup %1122  ;;  %v706_v43 = vadd.f32 %v705_v37, %v704_v28  ;;  %v711_v44 = vadd.f32 %v1121_v38, %v1115_v27  ;;  %v701_v15 = vadd.f32 %v700_v8, %v699_v1 }
 0x179   : > { %v721_v46 = vmul.f32 0.03448276, %v665_v39  ;;  %v671_v47 = vrot.slane %v670_v40, 2  ;;  %v676_v48 = vadd.f32 %v1109_v13, %v675_v41  ;;  %v647_v53 = vsel %vm607_vm0, %v1123_v42, 0.0 }
 0x17a   : > { %v712_v34 = vadd.f32 %v1111_v17, %v711_v44  ;;  %v707_v57 = vrot.slane %v706_v43, 2  ;;  %v725_v20 = vmul.f32 0.03448276, %v701_v15 }
 0x17b   : > { %v672_v52 = vadd.f32 %v671_v47, %v670_v40  ;;  %v677_v54 = vadd.f32 %v676_v48, %v631_v51  ;;  %v737_v55 = vsel %vm736_vm1, %v721_v46, %v720_v45 }
 0x17c   : > { %v713_v56 = vadd.f32 %v712_v34, %v647_v53  ;;  %v708_v2 = vadd.f32 %v707_v57, %v706_v43 }
 0x17d   : > { %v673_v58 = vrot.slane %v672_v52, 1  ;;  %v678_v59 = vrot.slane %v677_v54, 4 }
 0x17e   : > { %v714_v61 = vrot.slane %v713_v56, 4  ;;  %v709_v10 = vrot.slane %v708_v2, 1 }
 0x17f   : > { %v674_v63 = vadd.f32 %v673_v58, %v672_v52  ;;  %v679_v0 = vadd.f32 %v678_v59, %v677_v54 }
 0x180   : > { %v715_v3 = vadd.f32 %v714_v61, %v713_v56  ;;  %v710_v16 = vadd.f32 %v709_v10, %v708_v2 }
 0x181   : > { %v722_v4 = vmul.f32 0.03448276, %v674_v63  ;;  %v680_v5 = vrot.slane %v679_v0, 2 }
 0x182   : > { %v716_v62 = vrot.slane %v715_v3, 2  ;;  %v726_v22 = vmul.f32 0.03448276, %v710_v16 }
 0x183   : > { %v681_v7 = vadd.f32 %v680_v5, %v679_v0  ;;  %v739_v9 = vsel %vm738_vm2, %v722_v4, %v737_v55 }
 0x184   : > { %v717_v11 = vadd.f32 %v716_v62, %v715_v3 }
 0x185   : > { %v682_v12 = vrot.slane %v681_v7, 1 }
 0x186   : > { %v718_v13 = vrot.slane %v717_v11, 1 }
 0x187   : > { %v683_v14 = vadd.f32 %v682_v12, %v681_v7 }
 0x188   : > { %v719_v17 = vadd.f32 %v718_v13, %v717_v11 }
 0x189   : > { %v723_v18 = vmul.f32 0.03448276, %v683_v14 }
 0x18a   : > { %v727_v25 = vmul.f32 0.03448276, %v719_v17 }
 0x18b   : > { %v741_v21 = vsel %vm740_vm3, %v723_v18, %v739_v9 }
 0x18c   : > { %v743_v23 = vsel %vm742_vm4, %v724_v19, %v741_v21 }
 0x18d   : > { %v745_v26 = vsel %vm744_vm5, %v725_v20, %v743_v23 }
 0x18e   : > { %v747_v27 = vsel %vm746_vm6, %v726_v22, %v745_v26 }
 0x18f   : > { %v749_v28 = vsel %vm748_vm7, %v727_v25, %v747_v27 }
 0x190   : > { %751 = vst [vmem:[%s204_s4] sm:$0xff] %v749_v28 }
 0x191   : > { %1195 = shalt.err (!%p1192_p7)
}
 0x192   : > { %s1196_s22 = scalar_lea.hbm %s1519_s27, 128  ;;  %s1200_s10 = scalar_lea.hbm %s1566_s3, 256 }
 0x193   : > { %p1197_p9 = scmp.ne.s32.totalorder %s1519_s27, %s1196_s22  ;;  %p1201_p5 = scmp.lt.u32.totalorder %s1519_s27, %s1566_s3 }
 0x194   : > { %p1202_p11 = scmp.lt.u32.totalorder %s1200_s10, %s1196_s22  ;;  %p1204_p4 = scmp.lt.u32.totalorder %s1196_s22, %s1519_s27 }
 0x195   : > { %p1198_p1 = pnand %p1197_p9, %p1373_p12 }
 0x196   : > { %p1203_p2 = por %p1202_p11, %p1201_p5 }
 0x197   : > { %p1199_p0 = pneg %p1198_p1 }
 0x198   : > { %p1205_p6 = por %p1204_p4, %p1203_p2 }
 0x19a   : > { %p1206_p8 = pnand %p1205_p6, %p1199_p0 }
 0x19c   : > { %1209 = shalt.err (!%p1206_p8)
}
 0x19d   : > { %983 = dma.vmem_to_hbm [thread:$0]  (%p1373_p12), %s1521_s25, 128, %s1519_s27, %s753_s16  }
 0x19e PF: > { %s778_s20 = sand.u32 1, %s1240_s12   ;;  %p1581_p10 = scmp.ne.s32.totalorder %s1571_s19, 0 }
 0x19f   : > { %p1582_p13 = scmp.ge.s32.totalorder %s1252_s15, 2  ;;  %s779_s8 = scalar_lea.sflag [#allocation4], %s778_s20 }
 0x1a1   : > { %p994_p3 = pnand %p1582_p13, %p1581_p10 }
 0x1a3   : > { %1235 = dma.done.wait (!%p994_p3), %s779_s8, 128  }
 0x1a4   : > { %1237 = vsyncadd (!%p994_p3), %s779_s8, 4294967168  ;;  %p17_p7 = scmp.ge.s32.totalorder %s1335_s24, 4   ;;  %s1583_s12 = smov %s1244_s13 }
 0x1a5   : > { %s1584_s13 = smov %s1248_s14  ;;  %s1585_s14 = smov %s1369_s17 }
 0x1a6   : > { %s1586_s15 = smov %s1335_s24  ;;  %19 = sbr.rel (!%p17_p7) target bundleno = 6 (0x6), region = 81 }
 0x1ad   :  { %784 = vsyncpa [#allocation3], 1 }
 0x1ae   :  { %786 = vsyncpa [#allocation3 + $0x1], 1 }
 0x1af   :  { %787 = vsyncpa [#allocation6], 1 }
 0x1b0   :  { %788 = vsyncpa [#allocation4], 1 }
 0x1b1   :  { %790 = vsyncpa [#allocation4 + $0x1], 1 }

</bundles_post_ra>
